<compile_context>
chip_gen: v5e
topology: v5e:2x2
jax: 0.10.0
libtpu: 0.0.40
codegen_flags: <defaults>
</compile_context>

<pallas_src>
import math

import numpy as np
import jax
import jax.numpy as jnp
from jax import lax
from jax.scipy.special import logsumexp as jsp_logsumexp
from jax.experimental import pallas as pl
from jax.experimental.pallas import tpu as pltpu

# ----- STCLoss __init__ defaults (deterministic parameter init) -----
P0, PLAST, THALF = 0.5, 0.9, 10000.0
INIT_SCALE, CLAMP_MIN, CLAMP_MAX = 5.0, 1.0, 10.0
OUTPUT_BEAM = 10.0  # TODO(synk): output_beam pruning of k2.intersect_dense is not applied; forward here is exact.
REDUCTION = "mean"
STC_BLANK_IDX = 0

_LANES = 128
_VMEM_TILE_BUDGET = 16 << 20  # bytes budgeted for the live (tT, V) f32 working set


def _round_up(x, m):
    return ((x + m - 1) // m) * m


# ----------------------------- Pallas kernel -----------------------------
def _stc_emission_kernel(scale_ref, logits_ref, oh_ref, sel_out_ref, star_out_ref):
    x = logits_ref[0]                       # (tT, V) f32 time tile
    scale = scale_ref[0]                    # scalar (clamped raw_scale) from SMEM
    tT, V = x.shape

    # --- log_softmax row statistics; logp itself is never materialized ---
    m = jnp.max(x, axis=-1, keepdims=True)                        # (tT, 1)
    z = x - m                                                     # (tT, V)
    logz = jnp.log(jnp.sum(jnp.exp(z), axis=-1, keepdims=True))   # (tT, 1)

    # --- star lse = logsumexp_{v != blank}(scale * logp)
    #             = logsumexp_{v != blank}(scale * z) - scale * logz
    # (1, V) additive blank mask instead of a materialized (tT, V) iota+select.
    col_v = lax.broadcasted_iota(jnp.int32, (1, V), 1)
    blank_mask = jnp.where(col_v == STC_BLANK_IDX, -jnp.inf, 0.0)  # (1, V)
    sz = scale * z + blank_mask                                    # (tT, V)
    m2 = jnp.max(sz, axis=-1, keepdims=True)                       # (tT, 1)
    lse = (m2 + jnp.log(jnp.sum(jnp.exp(sz - m2), axis=-1, keepdims=True))
           - scale * logz)                                         # (tT, 1)

    # --- gather of retained vocab columns via one-hot MXU matmul; exact because each
    #     one-hot column sums to 1, so dot(logp, oh) == dot(z, oh) - logz.
    oh = oh_ref[...].astype(jnp.float32)                           # bf16 {0,1} -> f32
    sel = jnp.dot(z, oh, preferred_element_type=jnp.float32) - logz  # (tT, Kp)

    # --- logsubexp(lse, scale*sel) = lse + log1p(-exp(diff)), diff clamped <= 0
    #     (same formulation as the torch reference logsubexp).
    # TODO(synk): a log(-expm1(diff)) branch near diff=0 would retain more precision
    #             when one token absorbs nearly all star mass.
    diff = jnp.minimum(scale * sel - lse, 0.0)
    neglse = lse + jnp.log1p(-jnp.exp(diff))                       # (tT, Kp)

    # --- star slab: column 0 carries lse, columns >= 1 carry neglse(token k).
    col_k = lax.broadcasted_iota(jnp.int32, (1, neglse.shape[-1]), 1)
    star = jnp.where(col_k == 0, lse, neglse)                      # (tT, Kp)

    # Two lane-dense, unmasked, non-overlapping stores (no sub-128-lane slices).
    sel_out_ref[0] = sel
    star_out_ref[0] = star


def _choose_time_tile(T, V):
    """Largest multiple-of-8 time tile whose ~6 live (tT, V) f32 slabs fit the budget."""
    rows = _VMEM_TILE_BUDGET // max(1, 6 * V * 4)
    tT = min(T, max(8, int(rows)))
    if tT >= T:
        return T
    return max(8, (tT // 8) * 8)


def stc_emissions(logits, sel_onehot, scale):
    """Returns (sel, star), each (B, T, Kp) f32; Kp is the 128-padded retained-token count."""
    B, T, V = logits.shape
    Kp = sel_onehot.shape[1]
    tT = _choose_time_tile(T, V)
    grid = (B, pl.cdiv(T, tT))
    scale_arr = jnp.reshape(scale.astype(jnp.float32), (1,))

    cost = pl.CostEstimate(
        flops=2 * B * T * V * Kp + 10 * B * T * V,
        transcendentals=2 * B * T * V,
        bytes_accessed=4 * B * T * V + 2 * 4 * B * T * Kp + 2 * V * Kp,
    )

    sel, star = pl.pallas_call(
        _stc_emission_kernel,
        out_shape=(jax.ShapeDtypeStruct((B, T, Kp), jnp.float32),
                   jax.ShapeDtypeStruct((B, T, Kp), jnp.float32)),
        grid=grid,
        in_specs=[
            pl.BlockSpec(memory_space=pltpu.MemorySpace.SMEM),        # scale scalar
            pl.BlockSpec((1, tT, V), lambda b, t: (b, t, 0)),         # logits time tile
            pl.BlockSpec((V, Kp), lambda b, t: (0, 0)),               # one-hot selector (bf16)
        ],
        out_specs=(
            pl.BlockSpec((1, tT, Kp), lambda b, t: (b, t, 0)),
            pl.BlockSpec((1, tT, Kp), lambda b, t: (b, t, 0)),
        ),
        compiler_params=pltpu.CompilerParams(
            dimension_semantics=("parallel", "parallel"),
            vmem_limit_bytes=64 * 1024 * 1024,
        ),
        cost_estimate=cost,
    )(scale_arr, logits, sel_onehot)
    return sel, star


# -------------------- host-side glue (graph compilation) --------------------
def retain_and_map_tokens(targets_np, lengths_np, blank=STC_BLANK_IDX):
    # TODO(synk): retain_and_map_tokens_in_batch is not provided upstream; assumed
    # semantics: select_idx = [blank] + sorted unique batch tokens, targets remapped.
    toks = sorted({int(t) for tgt, ln in zip(targets_np, lengths_np)
                   for t in tgt[:int(ln)] if int(t) != blank})
    select_idx = [blank] + toks
    mapping = {tok: i for i, tok in enumerate(select_idx)}
    remapped = [[mapping[int(t)] for t in tgt[:int(ln)]]
                for tgt, ln in zip(targets_np, lengths_np)]
    return remapped, np.asarray(select_idx, dtype=np.int32)


def build_stc_arcs(target, star_idx, prob):
    """Port of STCGraphCompiler.build_single_stc_graph -> (arcs, final_arcs, num_states)."""
    L = len(target)
    S = 2 * L + 1
    arcs = []  # (src, dst, label, score)
    for l in range(S):
        idx = (l - 1) // 2
        label = target[idx] if l % 2 else STC_BLANK_IDX
        if label == STC_BLANK_IDX:
            arcs.append((l, l, label, 0.0))
        if l > 0:
            arcs.append((l - 1, l, label, 0.0))
        if l % 2 and l > 1:
            arcs.append((l - 2, l, label, 0.0))
    node_offset = S
    log_prob = math.log(prob)
    for l in range(L + 1):
        p1, p2, c1 = 2 * l - 1, 2 * l, node_offset + l
        idx = star_idx if l == L else star_idx + target[l]
        if p1 >= 0:
            arcs.append((p1, c1, idx, log_prob))
        arcs.append((p2, c1, idx, log_prob))
        arcs.append((c1, c1, idx, log_prob))
        if l < L:
            arcs.append((c1, 2 * l + 1, target[l], 0.0))
        arcs.append((c1, p2, STC_BLANK_IDX, 0.0))
    final_state = node_offset + L + 1
    final_arcs = [(S - 1, 0.0), (S - 2, 0.0), (node_offset + L, 0.0)]  # label -1 arcs
    return arcs, final_arcs, final_state + 1


# -------------------- exact log-semiring FSA forward (k2.ctc_loss) --------------------
def _fsa_log_forward(emissions, src, dst, lab, score, fsrc, fscore, num_states):
    # TODO(synk): k2 use_double_scores=True (float64) is approximated with float32 on TPU.
    S = num_states
    alpha0 = jnp.full((S,), -jnp.inf, jnp.float32).at[0].set(0.0)
    dst_onehot = dst[None, :] == jnp.arange(S)[:, None]        # (S, A)

    def step(alpha, em_t):
        contrib = alpha[src] + score + em_t[lab]               # (A,)
        masked = jnp.where(dst_onehot, contrib[None, :], -jnp.inf)
        return jsp_logsumexp(masked, axis=1), None

    alphaT, _ = lax.scan(step, alpha0, emissions)
    return jsp_logsumexp(alphaT[fsrc] + fscore)                # total log score


# ----------------------------- full forward -----------------------------
def stc_loss_forward(logits, targets, lengths, nstep=1):
    B, T, V = logits.shape
    targets_np = np.asarray(targets)
    lengths_np = np.asarray(lengths)

    # prob schedule (training step nstep)
    prob = PLAST + (P0 - PLAST) * math.exp(-nstep * math.log(2) / THALF)

    remapped, select_idx = retain_and_map_tokens(targets_np, lengths_np)
    K = len(select_idx)
    star_idx = K  # remapped tokens are 1..K-1, so max_token + 1 == K

    # parameters: raw_scale (Parameter, init 5.0) clamped
    raw_scale = jnp.float32(INIT_SCALE)
    scale = jnp.clip(raw_scale, CLAMP_MIN, CLAMP_MAX)

    # one-hot selector, padded to a 128-lane-multiple output width; bf16 (exact for 0/1)
    Kp = _round_up(K, _LANES)
    sel_onehot = jnp.zeros((V, Kp), jnp.bfloat16).at[
        jnp.asarray(select_idx), jnp.arange(K)].set(1.0)

    # --- Pallas hot path: lane-dense emission slabs, then logical (B, T, 2K) view ---
    sel_p, star_p = stc_emissions(logits, sel_onehot, scale)
    emissions = jnp.concatenate([sel_p[:, :, :K], star_p[:, :, :K]], axis=-1)  # (B, T, 2K)

    # --- STC decoding graphs (host-side, like k2 string-based compilation) ---
    arcs_list, finals_list, nstates = [], [], []
    for tgt in remapped:
        a, f, n = build_stc_arcs(tgt, star_idx, prob)
        arcs_list.append(a); finals_list.append(f); nstates.append(n)
    A = max(len(a) for a in arcs_list)
    F = max(len(f) for f in finals_list)
    Smax = max(nstates)

    src = np.zeros((B, A), np.int32); dst = np.zeros((B, A), np.int32)
    lab = np.zeros((B, A), np.int32); sc = np.full((B, A), -np.inf, np.float32)
    for b, a in enumerate(arcs_list):
        for i, (s, d, l, w) in enumerate(a):
            src[b, i], dst[b, i], lab[b, i], sc[b, i] = s, d, l, w
    fsrc = np.zeros((B, F), np.int32); fsc = np.full((B, F), -np.inf, np.float32)
    for b, f in enumerate(finals_list):
        for i, (s, w) in enumerate(f):
            fsrc[b, i], fsc[b, i] = s, w

    # supervision_segments: every sequence covers all T frames (encode_text_supervisions).
    tot = jax.vmap(
        lambda em, s, d, l, w, fs, fw: _fsa_log_forward(em, s, d, l, w, fs, fw, Smax)
    )(emissions, jnp.asarray(src), jnp.asarray(dst), jnp.asarray(lab),
      jnp.asarray(sc), jnp.asarray(fsrc), jnp.asarray(fsc))

    loss = -tot                                                  # (B,)
    if REDUCTION == "mean":
        # k2.ctc_loss 'mean': divide by target lengths, then mean over batch (torch CTC convention)
        loss = (loss / jnp.asarray(lengths).astype(loss.dtype)).mean()
    elif REDUCTION == "sum":
        loss = loss.sum()
    return {"loss": loss}


if __name__ == "__main__":
    B, T, V, L = 2, 16, 32, 4
    key = jax.random.PRNGKey(0)
    k1, k2 = jax.random.split(key)
    logits = jax.random.normal(k1, (B, T, V), dtype=jnp.float32)
    targets = jax.random.randint(k2, (B, L), 1, V, dtype=jnp.int32)   # non-blank tokens
    lengths = jnp.array([4, 3], dtype=jnp.int32)

    out = stc_loss_forward(logits, targets, lengths, nstep=1)
    loss = jax.block_until_ready(out["loss"])
    assert bool(jnp.isfinite(loss)), f"non-finite loss: {loss}"
    print("KERNEL_OK")
</pallas_src>

<mosaic_0001>
module attributes {stable_mosaic.version = 11 : i64} {
  func.func @_stc_emission_kernel(%arg0: i32, %arg1: i32, %arg2: memref<1xf32, #tpu.memory_space<smem>>, %arg3: memref<1x16x32xf32, #tpu.memory_space<vmem>>, %arg4: memref<32x128xbf16, #tpu.memory_space<vmem>>, %arg5: memref<1x16x128xf32, #tpu.memory_space<vmem>>, %arg6: memref<1x16x128xf32, #tpu.memory_space<vmem>>) attributes {dimension_semantics = [#tpu.dimension_semantics<parallel>, #tpu.dimension_semantics<parallel>], iteration_bounds = array<i64: 2, 1>, scalar_prefetch = 0 : i64, scratch_operands = 0 : i64, tpu.core_type = #tpu.core_type<tc>, window_params = [{transform_indices = @transform_0, window_bounds = array<i64: 1>}, {transform_indices = @transform_1, window_bounds = array<i64: 1, 16, 32>}, {pipeline_mode = #tpu.pipeline_mode<synchronous>, transform_indices = @transform_2, window_bounds = array<i64: 32, 128>}, {transform_indices = @transform_3, window_bounds = array<i64: 1, 16, 128>}, {transform_indices = @transform_4, window_bounds = array<i64: 1, 16, 128>}]} {
    %c0 = arith.constant 0 : index
    %c0_0 = arith.constant 0 : index
    %c0_1 = arith.constant 0 : index
    %0 = vector.load %arg3[%c0, %c0_0, %c0_1] : memref<1x16x32xf32, #tpu.memory_space<vmem>>, vector<1x16x32xf32>
    %1 = vector.shape_cast %0 : vector<1x16x32xf32> to vector<16x32xf32>
    %c0_2 = arith.constant 0 : index
    %2 = memref.load %arg2[%c0_2] : memref<1xf32, #tpu.memory_space<smem>>
    %cst = arith.constant dense<0xFF800000> : vector<16xf32>
    %3 = vector.multi_reduction <maximumf>, %1, %cst [1] : vector<16x32xf32> to vector<16xf32>
    %4 = vector.shape_cast %3 : vector<16xf32> to vector<16x1xf32>
    %5 = vector.broadcast %4 : vector<16x1xf32> to vector<16x32xf32>
    %6 = arith.subf %1, %5 : vector<16x32xf32>
    %7 = math.exp %6 : vector<16x32xf32>
    %cst_3 = arith.constant dense<0.000000e+00> : vector<16xf32>
    %8 = vector.multi_reduction <add>, %7, %cst_3 [1] : vector<16x32xf32> to vector<16xf32>
    %9 = vector.shape_cast %8 : vector<16xf32> to vector<16x1xf32>
    %10 = math.log %9 : vector<16x1xf32>
    %11 = tpu.iota {dimensions = array<i32: 1>} : vector<1x32xi32>
    %c0_i32 = arith.constant 0 : i32
    %12 = vector.broadcast %c0_i32 : i32 to vector<1x32xi32>
    %13 = arith.cmpi eq, %11, %12 : vector<1x32xi32>
    %cst_4 = arith.constant 0xFF800000 : f32
    %cst_5 = arith.constant 0.000000e+00 : f32
    %14 = vector.broadcast %cst_4 : f32 to vector<1x32xf32>
    %15 = vector.broadcast %cst_5 : f32 to vector<1x32xf32>
    %16 = arith.select %13, %14, %15 : vector<1x32xi1>, vector<1x32xf32>
    %17 = vector.broadcast %2 : f32 to vector<16x32xf32>
    %18 = arith.mulf %17, %6 : vector<16x32xf32>
    %19 = vector.broadcast %16 : vector<1x32xf32> to vector<16x32xf32>
    %20 = arith.addf %18, %19 : vector<16x32xf32>
    %cst_6 = arith.constant dense<0xFF800000> : vector<16xf32>
    %21 = vector.multi_reduction <maximumf>, %20, %cst_6 [1] : vector<16x32xf32> to vector<16xf32>
    %22 = vector.shape_cast %21 : vector<16xf32> to vector<16x1xf32>
    %23 = vector.broadcast %22 : vector<16x1xf32> to vector<16x32xf32>
    %24 = arith.subf %20, %23 : vector<16x32xf32>
    %25 = math.exp %24 : vector<16x32xf32>
    %cst_7 = arith.constant dense<0.000000e+00> : vector<16xf32>
    %26 = vector.multi_reduction <add>, %25, %cst_7 [1] : vector<16x32xf32> to vector<16xf32>
    %27 = vector.shape_cast %26 : vector<16xf32> to vector<16x1xf32>
    %28 = math.log %27 : vector<16x1xf32>
    %29 = arith.addf %22, %28 : vector<16x1xf32>
    %30 = vector.broadcast %2 : f32 to vector<16x1xf32>
    %31 = arith.mulf %30, %10 : vector<16x1xf32>
    %32 = arith.subf %29, %31 : vector<16x1xf32>
    %c0_8 = arith.constant 0 : index
    %c0_9 = arith.constant 0 : index
    %33 = vector.load %arg4[%c0_8, %c0_9] : memref<32x128xbf16, #tpu.memory_space<vmem>>, vector<32x128xbf16>
    %34 = arith.extf %33 : vector<32x128xbf16> to vector<32x128xf32>
    %cst_10 = arith.constant dense<0.000000e+00> : vector<16x128xf32>
    %35 = tpu.matmul %6, %34, %cst_10 {dimension_numbers = #tpu.dot_dimension_numbers<[1], [0], [0], [1], [0, 0, 1, 1], [], []>} : vector<16x32xf32>, vector<32x128xf32>, vector<16x128xf32> -> vector<16x128xf32>
    %36 = vector.broadcast %10 : vector<16x1xf32> to vector<16x128xf32>
    %37 = arith.subf %35, %36 : vector<16x128xf32>
    %38 = vector.broadcast %2 : f32 to vector<16x128xf32>
    %39 = arith.mulf %38, %37 : vector<16x128xf32>
    %40 = vector.broadcast %32 : vector<16x1xf32> to vector<16x128xf32>
    %41 = arith.subf %39, %40 : vector<16x128xf32>
    %cst_11 = arith.constant 0.000000e+00 : f32
    %42 = vector.broadcast %cst_11 : f32 to vector<16x128xf32>
    %43 = arith.minimumf %41, %42 : vector<16x128xf32>
    %44 = math.exp %43 : vector<16x128xf32>
    %cst_12 = arith.constant 0.000000e+00 : f32
    %45 = vector.broadcast %cst_12 : f32 to vector<16x128xf32>
    %46 = arith.subf %45, %44 : vector<16x128xf32>
    %47 = math.log1p %46 : vector<16x128xf32>
    %48 = vector.broadcast %32 : vector<16x1xf32> to vector<16x128xf32>
    %49 = arith.addf %48, %47 : vector<16x128xf32>
    %50 = tpu.iota {dimensions = array<i32: 1>} : vector<1x128xi32>
    %c0_i32_13 = arith.constant 0 : i32
    %51 = vector.broadcast %c0_i32_13 : i32 to vector<1x128xi32>
    %52 = arith.cmpi eq, %50, %51 : vector<1x128xi32>
    %53 = vector.shape_cast %52 : vector<1x128xi1> to vector<1x128xi1>
    %54 = vector.broadcast %53 : vector<1x128xi1> to vector<16x128xi1>
    %55 = vector.shape_cast %32 : vector<16x1xf32> to vector<16x1xf32>
    %56 = vector.broadcast %55 : vector<16x1xf32> to vector<16x128xf32>
    %57 = arith.select %54, %56, %49 : vector<16x128xi1>, vector<16x128xf32>
    %c0_14 = arith.constant 0 : index
    %c0_15 = arith.constant 0 : index
    %c0_16 = arith.constant 0 : index
    %58 = vector.load %arg5[%c0_14, %c0_15, %c0_16] : memref<1x16x128xf32, #tpu.memory_space<vmem>>, vector<1x16x128xf32>
    %59 = vector.shape_cast %58 : vector<1x16x128xf32> to vector<16x128xf32>
    %60 = vector.shape_cast %37 : vector<16x128xf32> to vector<1x16x128xf32>
    tpu.vector_store %arg5[%c0_14, %c0_15, %c0_16], %60 {strides = array<i32>} : memref<1x16x128xf32, #tpu.memory_space<vmem>>, vector<1x16x128xf32>,
    %c0_17 = arith.constant 0 : index
    %c0_18 = arith.constant 0 : index
    %c0_19 = arith.constant 0 : index
    %61 = vector.load %arg6[%c0_17, %c0_18, %c0_19] : memref<1x16x128xf32, #tpu.memory_space<vmem>>, vector<1x16x128xf32>
    %62 = vector.shape_cast %61 : vector<1x16x128xf32> to vector<16x128xf32>
    %63 = vector.shape_cast %57 : vector<16x128xf32> to vector<1x16x128xf32>
    tpu.vector_store %arg6[%c0_17, %c0_18, %c0_19], %63 {strides = array<i32>} : memref<1x16x128xf32, #tpu.memory_space<vmem>>, vector<1x16x128xf32>,
    return
  }
  func.func @transform_0(%arg0: i32, %arg1: i32) -> i32 {
    %c0_i32 = arith.constant 0 : i32
    %c0_i32_0 = arith.constant 0 : i32
    return %c0_i32 : i32
  }
  func.func @transform_1(%arg0: i32, %arg1: i32) -> (i32, i32, i32) {
    %c0_i32 = arith.constant 0 : i32
    %c0_i32_0 = arith.constant 0 : i32
    return %arg0, %arg1, %c0_i32 : i32, i32, i32
  }
  func.func @transform_2(%arg0: i32, %arg1: i32) -> (i32, i32) {
    %c0_i32 = arith.constant 0 : i32
    %c0_i32_0 = arith.constant 0 : i32
    %c0_i32_1 = arith.constant 0 : i32
    return %c0_i32, %c0_i32_0 : i32, i32
  }
  func.func @transform_3(%arg0: i32, %arg1: i32) -> (i32, i32, i32) {
    %c0_i32 = arith.constant 0 : i32
    %c0_i32_0 = arith.constant 0 : i32
    return %arg0, %arg1, %c0_i32 : i32, i32, i32
  }
  func.func @transform_4(%arg0: i32, %arg1: i32) -> (i32, i32, i32) {
    %c0_i32 = arith.constant 0 : i32
    %c0_i32_0 = arith.constant 0 : i32
    return %arg0, %arg1, %c0_i32 : i32, i32, i32
  }
}

</mosaic_0001>

<bundles_post_ra>
// kernel: tpu_custom_call.1
= control target key start
LH: loop header
LB: loop body
LE: loop exit
PB: predicated region body
PF: predicated region fallthrough
CT: control target
= control target key end

     0   :  { %s1156_s0 = inlined_call_operand.<no memory space> [shape: f32[1], index: 0, kind: input, shape index: {}]   ;;  %s1157_s1 = inlined_call_operand.hbm [shape: f32[2,16,32], index: 1, kind: input, shape index: {}]   ;;  %s1158_s2 = inlined_call_operand.hbm [shape: bf16[32,128], index: 2, kind: input, shape index: {}]   ;;  %s1159_s3 = inlined_call_operand.hbm [shape: f32[2,16,128], index: 3, kind: output, shape index: {0}]   ;;  %s1160_s4 = inlined_call_operand.hbm [shape: f32[2,16,128], index: 4, kind: output, shape index: {1}]  }
   0x1   :  { %1161 = sst [smem:[#allocation15_spill]] %s1158_s2 }
   0x2   :  { %10 = sst [smem:[#allocation2]] %s1156_s0 }
   0x3   :  { %11 = vsyncpa [#allocation4], 0 }
   0x4   :  { %13 = vsyncpa [#allocation4 + $0x1], 0 }
   0x5   :  { %14 = vsyncpa [#allocation7], 0 }
   0x6   :  { %15 = vsyncpa [#allocation5], 0 }
   0x7   :  { %17 = vsyncpa [#allocation5 + $0x1], 0 }
   0x8   :  { %18 = vsyncpa [#allocation10], 0 }
   0x9   :  { %20 = vsyncpa [#allocation10 + $0x1], 0  ;;  %s951_s17 = smov 0   ;;  %s953_s18 = smov 0  }
   0xa   :  { %s955_s19 = smov 0   ;;  %s957_s20 = smov 0  }
   0xb   :  { %s959_s21 = smov 0   ;;  %s961_s22 = smov 0  }
   0xc LB: > { %s587_s0 = sadd.s32 4294967295, %s913_s22   ;;  %s588_s23 = sadd.s32 4294967294, %s913_s22   ;;  %s913_s22 = sphi %s961_s22, %s26_s22   ;;  %s909_s21 = sphi %s959_s21, %s1174_s21   ;;  %s905_s20 = sphi %s957_s20, %s1173_s20   ;;  %s901_s19 = sphi %s955_s19, %s1172_s19   ;;  %s897_s18 = sphi %s953_s18, %s1171_s18   ;;  %s893_s17 = sphi %s951_s17, %s1170_s17  }
   0xd   : > { %p81_p0 = scmp.ne.s32.totalorder %s897_s18, %s893_s17  ;;  %p985_p1 = scmp.eq.s32.totalorder %s587_s0, 0 }
   0xe   : > { %p989_p2 = scmp.eq.s32.totalorder %s587_s0, 1  ;;  %p134_p3 = scmp.eq.s32.totalorder %s588_s23, 1 }
   0xf   : > { %p995_p4 = por %p985_p1, %p81_p0  ;;  %p589_p5 = scmp.ge.s32.totalorder %s913_s22, 1 }
  0x10   : > { %p1000_p6 = por %p134_p3, %p81_p0  ;;  %p169_p7 = scmp.lt.s32.totalorder %s913_s22, 3 }
  0x11   : > { %s1166_s2 = sld [smem:[#allocation15_spill]]  ;;  %s915_s6 = smov [#allocation6]  }
  0x12   : > { %p1008_p8 = pnand %p589_p5, %p169_p7  ;;  %s185_s7 = sshll.u32 %s915_s6, 4  ;;  %s186_s7 = int_to_ptr.vmem [resolvable:$true] %s185_s7 }
  0x13   : > { %p591_p11 = scmp.ge.s32.totalorder %s913_s22, 2  ;;  %s916_s8 = smov 64  }
  0x14   : > { %p636_p9 = pneg %p1008_p8  ;;  %s917_s9 = smov 4  }
  0x15   : > { %s38_s10 = sadd.s32 1, %s909_s21  ;;  %s68_s11 = sadd.s32 1, %s901_s19 }
  0x16   : > { %p637_p10 = pnand %p636_p9, %p985_p1  ;;  %p40_p12 = scmp.ge.s32.totalorder %s38_s10, 2 }
  0x17   : > { %s183_s30 = sshll.u32 %s1166_s2, 4  ;;  %p75_p13 = scmp.ne.s32.totalorder %s901_s19, %s897_s18  ;;  %s184_s30 = int_to_ptr.hbm [resolvable:$true] %s183_s30 }
  0x18   : > { %639 = dma.hbm_to_vmem [thread:$0]  (!%p637_p10), %s184_s30, 256, %s186_s7, [#allocation7], %s916_s8, %s916_s8, %s917_s9  }
  0x19   : > { %p76_p0 = scmp.eq.s32.totalorder %s913_s22, 0  ;;  %s1176_s10 = smov (%p40_p12, %s38_s10), 0 }
  0x1a   : > { %p1030_p5 = por %p989_p2, %p75_p13  ;;  %s63_s14 = ssub.s32 %s909_s21, %s1176_s10 }
  0x1b   : > { %p1024_p3 = por %p76_p0, %p75_p13  ;;  %p652_p7 = scmp.lt.s32.totalorder %s913_s22, 2 }
  0x1c   : > { %p66_p9 = scmp.eq.s32.totalorder %s63_s14, 0  ;;  %s199_s15 = sand.u32 1, %s901_s19  }
  0x1d   : > { %s592_s16 = sshll.u32 %s199_s15, 4  ;;  %s610_s23 = sshll.u32 %s909_s21, 4 }
  0x1e   : > { %s1039_s0 = scalar_select %p66_p9, %s901_s19, %s68_s11  }
  0x1f   : > { %s210_s30 = scalar_lea.hbm %s1157_s1, %s610_s23  ;;  %s203_s6 = scalar_lea.vmem [#allocation3], %s592_s16 }
  0x20   : > { %s213_s7 = sshll.u32 %s203_s6, 4  ;;  %s211_s25 = sshll.u32 %s210_s30, 4  ;;  %s214_s7 = int_to_ptr.vmem [resolvable:$true] %s213_s7  ;;  %s212_s25 = int_to_ptr.hbm [resolvable:$true] %s211_s25 }
  0x21   : > { %p641_p2 = pnand %p652_p7, %p1024_p3  ;;  %s200_s8 = scalar_lea.sflag [#allocation4], %s199_s15 }
  0x22   : > { %s918_s9 = smov 128   ;;  %s919_s2 = smov 8  }
  0x23   : > { %643 = dma.hbm_to_vmem [thread:$0]  (!%p641_p2), %s212_s25, 256, %s214_s7, %s200_s8, %s918_s9, %s918_s9, %s919_s2  }
  0x24   : > { %225 = sbr.rel (%p1008_p8) target bundleno = 467 (0x1d3), region = 32  ;;  %s1050_s11 = sand.u32 (!%p1008_p8), 1, %s897_s18  }
  0x25   : > { %s1053_s14 = sshll.u32 (!%p1008_p8), %s1050_s11, 4  ;;  %s228_s16 = scalar_lea.sflag (!%p1008_p8), [#allocation4], %s1050_s11 }
  0x26   : > { %s231_s23 = scalar_lea.vmem (!%p1008_p8), [#allocation3], %s1053_s14 }
  0x29   : > { %876 = dma.done.wait (%p995_p4), %s228_s16, 256  }
  0x2a   : > { %878 = vsyncadd (%p995_p4), %s228_s16, 4294967040 }
  0x2b   : > { %880 = dma.done.wait (%p985_p1), [#allocation7], 256  }
  0x2c   : > { %882 = vsyncadd (%p985_p1), [#allocation7], 4294967040  ;;  %vm273_vm0 = vcmask 261120   ;;  %v270_v0 = vld [vmem:[%s231_s23] sm:$0xff]  ;;  %v621_v1 = vld [vmem:[#allocation6 + $0x8] sm:$0xff]   ;;  %v296_v10 = vlaneseq  ;;  %s272_s2 = sld [smem:[#allocation2]] }
  0x2d   : > { %v274_v2 = vsel %vm273_vm0, %v270_v0, -inf  ;;  %v620_v3 = vunpack.c.h.bf16 %v621_v1  ;;  %v619_v4 = vunpack.c.l.bf16 %v621_v1  ;;  %v614_v5 = vld [vmem:[#allocation6] sm:$0xff]   ;;  %v271_v7 = vld [vmem:[%s231_s23 + $0x8] sm:$0xff]  ;;  %v920_v15 = vmov 0.0   ;;  %s259_s24 = scalar_lea.vmem [#allocation8], %s1053_s14  ;;  %s611_s5 = sshll.u32 %s905_s20, 4 }
  0x2e   : > { %275 = vmax.xlane.f32.xlu0 %v274_v2  ;;  %v616_v6 = vunpack.c.h.bf16 %v614_v5  ;;  %v277_v8 = vsel %vm273_vm0, %v271_v7, -inf  ;;  %v615_v9 = vunpack.c.l.bf16 %v614_v5  ;;  %v1067_v11 = vand.u32 127, %v296_v10  ;;  %s432_s26 = sshll.u32 %s259_s24, 4  ;;  %s431_s28 = scalar_lea.hbm %s1159_s3, %s611_s5  ;;  %s433_s26 = int_to_ptr.vmem [resolvable:$true] %s432_s26 }
  0x2f   : > { %359 = vmatpush.msra.mxu0 %v620_v3  ;;  %622 = vmatpush.msra.mxu1 %v620_v3  ;;  %s434_s29 = sshll.u32 %s431_s28, 4  ;;  %s413_s30 = scalar_lea.sflag [#allocation5], %s1050_s11  ;;  %s435_s29 = int_to_ptr.hbm [resolvable:$true] %s434_s29 }
  0x30   : > { %vm298_vm1 = vcmp.eq.s32.totalorder %v1067_v11, 0  ;;  %s809_s6 = sshra.s32 %s435_s29, 4  ;;  %s815_s9 = scalar_lea.hbm %s1159_s3, 32  ;;  %s810_s6 = int_to_ptr.hbm [resolvable:$true] %s809_s6 }
  0x31   : > { %360 = vmatpush.msra.mxu0 %v619_v4  ;;  %623 = vmatpush.msra.mxu1 %v619_v4  ;;  %v299_v16 = vsel %vm298_vm1, -inf, %v920_v15  ;;  %s811_s7 = scalar_lea.hbm %s810_s6, 16  ;;  %p816_p10 = scmp.lt.s32.totalorder %s810_s6, %s1159_s3 }
  0x32   : > { %v1070_v13 = vstv %s272_s2  ;;  %p812_p1 = scmp.ne.s32.totalorder %s810_s6, %s811_s7  ;;  %p817_p12 = scmp.lt.s32.totalorder %s815_s9, %s811_s7 }
  0x33   : > { %361 = vmatpush.msra.mxu0 %v616_v6  ;;  %624 = vmatpush.msra.mxu1 %v616_v6 }
  0x34   : > { %p813_p4 = pnand %p812_p1, %p1030_p5  ;;  %p818_p13 = por %p817_p12, %p816_p10 }
  0x35   : > { %362 = vmatpush.msra.mxu0 %v615_v9  ;;  %625 = vmatpush.msra.mxu1 %v615_v9 }
  0x36   : > { %278 = vmax.xlane.f32.xlu0 %v277_v8  ;;  %p814_p8 = pneg %p813_p4 }
  0x38   : > { %p819_p0 = pnand %p818_p13, %p814_p8 }
  0xa1   : > { %v276_v12 = vpop.xlane.xlu0 %275 }
  0xa2   : > { %v280_v14 = vsub.f32 %v270_v0, %v276_v12 }
  0xa4   : > { %v282_v17 = vmul.f32 1.442695, %v280_v14  ;;  %600 = vmatmul.msk.f32.vlgmr.msra.gmra.mxu0 %vm273_vm0, %v280_v14  ;;  %v301_v18 = vmul.f32 %v1070_v13, %v280_v14 }
  0xa6   : > { %711 = vpow2.f32 %v282_v17  ;;  %v303_v19 = vadd.f32 %v301_v18, %v299_v16 }
  0xa8   : > { %v305_v20 = vsel %vm273_vm0, %v303_v19, -inf }
  0xa9   : > { %306 = vmax.xlane.f32.xlu1 %v305_v20  ;;  %v279_v21 = vpop.xlane.xlu0 %278 }
  0xaa   : > { %v281_v22 = vsub.f32 %v271_v7, %v279_v21 }
  0xac   : > { %v712_v23 = vpop.eup %711  ;;  %v284_v24 = vmul.f32 1.442695, %v281_v22  ;;  %601 = vmatmul.msk.f32.vlgmr.msra.gmra.mxu1 %vm273_vm0, %v281_v22  ;;  %v302_v25 = vmul.f32 %v1070_v13, %v281_v22 }
  0xad   : > { %v286_v26 = vsel %vm273_vm0, %v712_v23, 0.0 }
  0xae   : > { %713 = vpow2.f32 %v284_v24  ;;  %287 = vadd.xlane.f32.xlu2 %v286_v26  ;;  %v304_v27 = vadd.f32 %v302_v25, %v299_v16 }
  0xb0   : > { %v308_v28 = vsel %vm273_vm0, %v304_v27, -inf }
  0xb1   : > { %309 = vmax.xlane.f32.xlu1 %v308_v28 }
  0xb4   : > { %v714_v29 = vpop.eup %713 }
  0xb5   : > { %v289_v30 = vsel %vm273_vm0, %v714_v29, 0.0 }
  0xb6   : > { %290 = vadd.xlane.f32.xlu2 %v289_v30 }
 0x11c   : > { %v307_v31 = vpop.xlane.xlu1 %306 }
 0x11d   : > { %v311_v32 = vsub.f32 %v303_v19, %v307_v31 }
 0x11f   : > { %v313_v33 = vmul.f32 1.442695, %v311_v32 }
 0x121   : > { %715 = vpow2.f32 %v313_v33  ;;  %v288_v34 = vpop.xlane.xlu2 %287  ;;  %v364_v43 = vpop.f32.mrf.mxu0 }
 0x122   : > { %717 = vlog2.f32 %v288_v34 }
 0x124   : > { %v310_v35 = vpop.xlane.xlu1 %309 }
 0x125   : > { %v312_v36 = vsub.f32 %v304_v27, %v310_v35 }
 0x127   : > { %v716_v37 = vpop.eup %715  ;;  %v315_v38 = vmul.f32 1.442695, %v312_v36 }
 0x128   : > { %v718_v39 = vpop.eup %717  ;;  %v317_v40 = vsel %vm273_vm0, %v716_v37, 0.0 }
 0x129   : > { %v293_v41 = vmul.f32 0.6931472, %v718_v39  ;;  %719 = vpow2.f32 %v315_v38  ;;  %318 = vadd.xlane.f32.xlu0 %v317_v40  ;;  %v291_v42 = vpop.xlane.xlu2 %290  ;;  %v367_v49 = vpop.f32.mrf.mxu1 }
 0x12a   : > { %721 = vlog2.f32 %v291_v42 }
 0x12b   : > { %v370_v44 = vsub.f32 %v364_v43, %v293_v41 }
 0x12d   : > { %408 = vst [vmem:[%s259_s24] sm:$0xff] %v370_v44 }
 0x12f   : > { %v720_v45 = vpop.eup %719 }
 0x130   : > { %v722_v46 = vpop.eup %721  ;;  %v320_v47 = vsel %vm273_vm0, %v720_v45, 0.0 }
 0x131   : > { %v295_v48 = vmul.f32 0.6931472, %v722_v46  ;;  %321 = vadd.xlane.f32.xlu1 %v320_v47 }
 0x133   : > { %v371_v50 = vsub.f32 %v367_v49, %v295_v48 }
 0x135   : > { %409 = vst [vmem:[%s259_s24 + $0x8] sm:$0xff] %v371_v50 }
 0x136   : > { %822 = shalt.err (!%p819_p0)
}
 0x137   : > { %s921_s2 = smov 128   ;;  %s922_s24 = smov 8   ;;  %v329_v55 = vmul.f32 %v1070_v13, %v293_v41  ;;  %v372_v57 = vmul.f32 %v370_v44, %v1070_v13  ;;  %v330_v63 = vmul.f32 %v1070_v13, %v295_v48  ;;  %v373_v2 = vmul.f32 %v371_v50, %v1070_v13 }
 0x138   : > { %632 = dma.vmem_to_hbm [thread:$0]  (%p1030_p5), %s433_s26, 256, %s435_s29, %s413_s30, %s921_s2, %s921_s2, %s922_s24  }
 0x139   : > { %s266_s26 = scalar_lea.vmem [#allocation9], %s1053_s14  ;;  %s450_s28 = scalar_lea.hbm %s1160_s4, %s611_s5 }
 0x13a   : > { %s451_s29 = sshll.u32 %s266_s26, 4  ;;  %s453_s30 = sshll.u32 %s450_s28, 4  ;;  %s452_s29 = int_to_ptr.vmem [resolvable:$true] %s451_s29  ;;  %s454_s30 = int_to_ptr.hbm [resolvable:$true] %s453_s30 }
 0x13b   : > { %s418_s20 = scalar_lea.sflag [#allocation10], %s1050_s11  ;;  %s837_s14 = sshra.s32 %s454_s30, 4  ;;  %s838_s14 = int_to_ptr.hbm [resolvable:$true] %s837_s14 }
 0x13c   : > { %s839_s6 = scalar_lea.hbm %s838_s14, 16  ;;  %s843_s25 = scalar_lea.hbm %s1160_s4, 32 }
 0x13d   : > { %p840_p3 = scmp.ne.s32.totalorder %s838_s14, %s839_s6  ;;  %p844_p2 = scmp.lt.s32.totalorder %s838_s14, %s1160_s4 }
 0x13e   : > { %p845_p1 = scmp.lt.s32.totalorder %s843_s25, %s839_s6 }
 0x13f   : > { %p841_p7 = pnand %p840_p3, %p1030_p5 }
 0x140   : > { %p846_p4 = por %p845_p1, %p844_p2 }
 0x141   : > { %p842_p9 = pneg %p841_p7 }
 0x143   : > { %p847_p8 = pnand %p846_p4, %p842_p9 }
 0x19c   : > { %v319_v51 = vpop.xlane.xlu0 %318 }
 0x19d   : > { %723 = vlog2.f32 %v319_v51 }
 0x1a3   : > { %v724_v52 = vpop.eup %723 }
 0x1a4   : > { %v324_v53 = vmul.f32 0.6931472, %v724_v52  ;;  %v322_v54 = vpop.xlane.xlu1 %321 }
 0x1a5   : > { %725 = vlog2.f32 %v322_v54 }
 0x1a6   : > { %v327_v56 = vadd.f32 %v324_v53, %v307_v31 }
 0x1a8   : > { %v331_v58 = vsub.f32 %v327_v56, %v329_v55 }
 0x1aa   : > { %v374_v59 = vsub.f32 %v372_v57, %v331_v58 }
 0x1ab   : > { %v726_v60 = vpop.eup %725 }
 0x1ac   : > { %v376_v61 = vmin.f32 %v374_v59, 0.0  ;;  %v326_v62 = vmul.f32 0.6931472, %v726_v60 }
 0x1ae   : > { %v378_v0 = vmul.f32 1.442695, %v376_v61  ;;  %v328_v1 = vadd.f32 %v326_v62, %v310_v35 }
 0x1b0   : > { %727 = vpow2.f32 %v378_v0  ;;  %v332_v3 = vsub.f32 %v328_v1, %v330_v63 }
 0x1b2   : > { %v375_v4 = vsub.f32 %v373_v2, %v332_v3 }
 0x1b4   : > { %v377_v5 = vmin.f32 %v375_v4, 0.0 }
 0x1b6   : > { %v728_v6 = vpop.eup %727  ;;  %v380_v7 = vmul.f32 1.442695, %v377_v5 }
 0x1b7   : > { %v382_v8 = vsub.f32 0.0, %v728_v6 }
 0x1b8   : > { %729 = vpow2.f32 %v380_v7 }
 0x1b9   : > { %v384_v9 = vadd.f32 1.0, %v382_v8  ;;  %v387_v10 = vmul.f32 -0.5, %v382_v8  ;;  %v390_v15 = vand.u32 2147483647, %v382_v8 }
 0x1bb   : > { %731 = vlog2.f32 %v384_v9  ;;  %v388_v14 = vadd.f32 1.0, %v387_v10  ;;  %vm391_vm2 = vcmp.lt.f32.partialorder %v390_v15, 0.0004427343 }
 0x1bd   : > { %v389_v19 = vmul.f32 %v388_v14, %v382_v8 }
 0x1be   : > { %v730_v12 = vpop.eup %729 }
 0x1bf   : > { %v383_v16 = vsub.f32 0.0, %v730_v12 }
 0x1c1   : > { %v732_v17 = vpop.eup %731  ;;  %v393_v18 = vadd.f32 1.0, %v383_v16  ;;  %v396_v20 = vmul.f32 -0.5, %v383_v16  ;;  %v399_v25 = vand.u32 2147483647, %v383_v16 }
 0x1c2   : > { %v386_v13 = vmul.f32 0.6931472, %v732_v17 }
 0x1c3   : > { %733 = vlog2.f32 %v393_v18  ;;  %v397_v23 = vadd.f32 1.0, %v396_v20  ;;  %vm400_vm3 = vcmp.lt.f32.partialorder %v399_v25, 0.0004427343 }
 0x1c4   : > { %v392_v21 = vsel %vm391_vm2, %v389_v19, %v386_v13 }
 0x1c5   : > { %v402_v22 = vadd.f32 %v392_v21, %v331_v58  ;;  %v398_v28 = vmul.f32 %v397_v23, %v383_v16 }
 0x1c7   : > { %v406_v24 = vsel %vm298_vm1, %v331_v58, %v402_v22 }
 0x1c8   : > { %410 = vst [vmem:[%s266_s26] sm:$0xff] %v406_v24 }
 0x1c9   : > { %v734_v26 = vpop.eup %733 }
 0x1ca   : > { %v395_v27 = vmul.f32 0.6931472, %v734_v26 }
 0x1cc   : > { %v401_v29 = vsel %vm400_vm3, %v398_v28, %v395_v27 }
 0x1cd   : > { %v403_v30 = vadd.f32 %v401_v29, %v332_v3 }
 0x1cf   : > { %v407_v31 = vsel %vm298_vm1, %v332_v3, %v403_v30 }
 0x1d0   : > { %411 = vst [vmem:[%s266_s26 + $0x8] sm:$0xff] %v407_v31 }
 0x1d1   : > { %850 = shalt.err (!%p847_p8)
}
 0x1d2   : > { %633 = dma.vmem_to_hbm [thread:$0]  (%p1030_p5), %s452_s29, 256, %s454_s30, %s418_s20, %s921_s2, %s921_s2, %s922_s24  }
 0x1d3 PF: > { %s468_s11 = sand.u32 1, %s893_s17   ;;  %p645_p10 = pnand %p591_p11, %p1000_p6 }
 0x1d4   : > { %s469_s16 = scalar_lea.sflag [#allocation5], %s468_s11 }
 0x1d5   : > { %p646_p12 = pneg %p645_p10 }
 0x1d7   : > { %884 = dma.done.wait (%p646_p12), %s469_s16, 256  }
 0x1d8   : > { %886 = vsyncadd (%p646_p12), %s469_s16, 4294967040  ;;  %s479_s23 = scalar_lea.sflag [#allocation10], %s468_s11 }
 0x1d9   : > { %888 = dma.done.wait (%p646_p12), %s479_s23, 256  }
 0x1da   : > { %890 = vsyncadd (%p646_p12), %s479_s23, 4294967040  ;;  %s26_s22 = sadd.s32 1, %s913_s22   ;;  %s1170_s17 = smov %s897_s18 }
 0x1db   : > { %p23_p13 = scmp.ge.s32.totalorder %s26_s22, 4   ;;  %s1171_s18 = smov %s901_s19 }
 0x1dc   : > { %s1172_s19 = smov %s1039_s0  ;;  %s1173_s20 = smov %s909_s21 }
 0x1dd   : > { %s1174_s21 = smov %s1176_s10  ;;  %25 = sbr.rel (!%p23_p13) target bundleno = 12 (0xc), region = 98 }
 0x1e2   :  { %485 = vsyncpa [#allocation4], 1 }
 0x1e3   :  { %487 = vsyncpa [#allocation4 + $0x1], 1 }
 0x1e4   :  { %488 = vsyncpa [#allocation7], 1 }
 0x1e5   :  { %489 = vsyncpa [#allocation5], 1 }
 0x1e6   :  { %491 = vsyncpa [#allocation5 + $0x1], 1 }
 0x1e7   :  { %492 = vsyncpa [#allocation10], 1 }
 0x1e8   :  { %494 = vsyncpa [#allocation10 + $0x1], 1 }

</bundles_post_ra>
